<compile_context>
chip_gen: v6e
topology: v6e:2x2x1
jax: 0.10.0
libtpu: 0.0.40
codegen_flags: <defaults>
</compile_context>

<pallas_src>
import jax
import jax.numpy as jnp
from jax.experimental import pallas as pl
from jax.experimental.pallas import tpu as pltpu


def _round_up(x, m):
    return ((x + m - 1) // m) * m


def _gated_conv_kernel(xcol_ref, w_ref, b_ref, out_ref):
    # xcol_ref: (TM, Kdim) bf16        w_ref: (Kdim, 2*COUT_P) bf16
    # b_ref   : (1, 2*COUT_P) f32      out_ref: (TM, COUT_P) f32
    acc = jnp.dot(xcol_ref[...], w_ref[...], preferred_element_type=jnp.float32)
    acc = acc + b_ref[...]                       # broadcast bias over rows
    cp = out_ref.shape[-1]                       # lane-aligned (multiple of 128)
    x_half = acc[:, :cp]                         # ReLU branch
    y_half = acc[:, cp:]                         # Sigmoid branch
    gate = pl.reciprocal(1.0 + jnp.exp(-y_half), approx=True)   # sigmoid on EUP
    out_ref[...] = (jnp.maximum(x_half, 0.0) * gate).astype(out_ref.dtype)


def gated_conv(x, weight, bias, *, k_size, stride=1, dilation=1, padding=1,
               tile_m=512):
    """x: (N, Cin, H, W)  weight: (2*Cout, Cin, k, k)  bias: (2*Cout,)
    Returns (N, Cout, Ho, Wo) matching the PyTorch GatedConv forward."""
    # TODO(synk): stride/dilation != 1 not covered by this kernel path.
    assert stride == 1 and dilation == 1
    N, Cin, H, W = x.shape
    two_cout, cin_w, kh_, kw_ = weight.shape
    assert cin_w == Cin and kh_ == k_size and kw_ == k_size
    cout = two_cout // 2

    Ho = H + 2 * padding - k_size + 1
    Wo = W + 2 * padding - k_size + 1
    M = N * Ho * Wo
    Kdim = Cin * k_size * k_size

    # --- im2col, built directly in (n, ho, wo, kh, kw, cin) order ---
    x_nhwc = jnp.transpose(x, (0, 2, 3, 1))
    xp = jnp.pad(x_nhwc, ((0, 0), (padding, padding), (padding, padding), (0, 0)))
    rows = []
    for kh in range(k_size):
        taps = [xp[:, kh:kh + Ho, kw:kw + Wo, :] for kw in range(k_size)]
        rows.append(jnp.stack(taps, axis=3))             # (N, Ho, Wo, k, Cin)
    xcol = jnp.stack(rows, axis=3)                       # (N, Ho, Wo, kh, kw, Cin)
    xcol = xcol.reshape(M, Kdim).astype(jnp.bfloat16)

    # --- weight OIHW -> (kh, kw, cin, 2*cout); pad each gate half to 128 lanes ---
    wmat = jnp.transpose(weight, (2, 3, 1, 0)).reshape(Kdim, two_cout)
    cout_p = _round_up(cout, 128)
    pad_c = cout_p - cout
    w_x = jnp.pad(wmat[:, :cout], ((0, 0), (0, pad_c)))
    w_y = jnp.pad(wmat[:, cout:], ((0, 0), (0, pad_c)))
    w_pad = jnp.concatenate([w_x, w_y], axis=1).astype(jnp.bfloat16)  # (Kdim, 2*cout_p)
    b_x = jnp.pad(bias[:cout], (0, pad_c))
    b_y = jnp.pad(bias[cout:], (0, pad_c))
    b_pad = jnp.concatenate([b_x, b_y]).reshape(1, 2 * cout_p).astype(jnp.float32)

    # --- tile M; pad rows to a multiple of the tile size ---
    tm = _round_up(min(tile_m, _round_up(M, 8)), 8)
    m_pad = _round_up(M, tm)
    if m_pad != M:
        xcol = jnp.pad(xcol, ((0, m_pad - M), (0, 0)))

    grid = (m_pad // tm,)
    cost = pl.CostEstimate(
        flops=2 * m_pad * Kdim * 2 * cout_p,
        transcendentals=m_pad * cout_p,
        bytes_accessed=(m_pad * Kdim * 2            # bf16 xcol tiles
                        + Kdim * 2 * cout_p * 2     # bf16 resident weight
                        + 2 * cout_p * 4            # f32 bias
                        + m_pad * cout_p * 4))      # f32 output

    out_flat = pl.pallas_call(
        _gated_conv_kernel,
        out_shape=jax.ShapeDtypeStruct((m_pad, cout_p), jnp.float32),
        grid_spec=pltpu.PrefetchScalarGridSpec(
            num_scalar_prefetch=0,
            grid=grid,
            in_specs=[
                pl.BlockSpec((tm, Kdim), lambda i: (i, 0)),           # streamed rows
                pl.BlockSpec((Kdim, 2 * cout_p), lambda i: (0, 0)),   # resident weight
                pl.BlockSpec((1, 2 * cout_p), lambda i: (0, 0)),      # resident bias
            ],
            out_specs=pl.BlockSpec((tm, cout_p), lambda i: (i, 0)),
        ),
        compiler_params=pltpu.CompilerParams(
            dimension_semantics=("parallel",)),
        cost_estimate=cost,
    )(xcol, w_pad, b_pad)

    # (M_pad, COUT_P) -> (N, Ho, Wo, Cout) -> NCHW
    out = out_flat[:M, :cout].reshape(N, Ho, Wo, cout)
    return jnp.transpose(out, (0, 3, 1, 2))


if __name__ == "__main__":
    key = jax.random.PRNGKey(0)
    k_x, k_w, k_b = jax.random.split(key, 3)

    # small shapes consistent with the module
    N, Cin, H, W = 2, 4, 16, 16
    Cout, K, PAD = 8, 3, 1

    x = jax.random.normal(k_x, (N, Cin, H, W), dtype=jnp.float32)
    fan_in = Cin * K * K
    bound = 1.0 / (fan_in ** 0.5)
    weight = jax.random.uniform(k_w, (2 * Cout, Cin, K, K), jnp.float32, -bound, bound)
    bias = jax.random.uniform(k_b, (2 * Cout,), jnp.float32, -bound, bound)

    out = gated_conv(x, weight, bias, k_size=K, padding=PAD)
    out = jax.block_until_ready(out)

    # Reference with matched precision: bf16 conv inputs, f32 accumulation.
    ref = jax.lax.conv_general_dilated(
        x.astype(jnp.bfloat16), weight.astype(jnp.bfloat16),
        window_strides=(1, 1), padding=[(PAD, PAD), (PAD, PAD)],
        dimension_numbers=("NCHW", "OIHW", "NCHW"),
        preferred_element_type=jnp.float32)
    ref = ref + bias.reshape(1, -1, 1, 1)
    x_half, y_half = ref[:, :Cout], ref[:, Cout:]
    expected = jnp.maximum(x_half, 0.0) * jax.nn.sigmoid(y_half)

    assert out.shape == (N, Cout, H, W)
    # tolerance covers bf16 matmul accumulation-order + EUP approx-reciprocal
    if not jnp.allclose(out, expected, rtol=1e-2, atol=1e-2):
        raise AssertionError("Pallas GatedConv does not match reference")

    print("KERNEL_OK")
</pallas_src>

<mosaic_0001>
module attributes {stable_mosaic.version = 11 : i64} {
  func.func @_gated_conv_kernel(%arg0: i32, %arg1: memref<512x36xbf16, #tpu.memory_space<vmem>>, %arg2: memref<36x256xbf16, #tpu.memory_space<vmem>>, %arg3: memref<1x256xf32, #tpu.memory_space<vmem>>, %arg4: memref<512x128xf32, #tpu.memory_space<vmem>>) attributes {dimension_semantics = [#tpu.dimension_semantics<parallel>], iteration_bounds = array<i64: 1>, scalar_prefetch = 0 : i64, scratch_operands = 0 : i64, tpu.core_type = #tpu.core_type<tc>, window_params = [{transform_indices = @transform_0, window_bounds = array<i64: 512, 36>}, {pipeline_mode = #tpu.pipeline_mode<synchronous>, transform_indices = @transform_1, window_bounds = array<i64: 36, 256>}, {pipeline_mode = #tpu.pipeline_mode<synchronous>, transform_indices = @transform_2, window_bounds = array<i64: 1, 256>}, {transform_indices = @transform_3, window_bounds = array<i64: 512, 128>}]} {
    %c0 = arith.constant 0 : index
    %c0_0 = arith.constant 0 : index
    %0 = vector.load %arg1[%c0, %c0_0] : memref<512x36xbf16, #tpu.memory_space<vmem>>, vector<512x36xbf16>
    %c0_1 = arith.constant 0 : index
    %c0_2 = arith.constant 0 : index
    %1 = vector.load %arg2[%c0_1, %c0_2] : memref<36x256xbf16, #tpu.memory_space<vmem>>, vector<36x256xbf16>
    %cst = arith.constant dense<0.000000e+00> : vector<512x256xf32>
    %2 = tpu.matmul %0, %1, %cst {dimension_numbers = #tpu.dot_dimension_numbers<[1], [0], [0], [1], [0, 0, 1, 1], [], []>} : vector<512x36xbf16>, vector<36x256xbf16>, vector<512x256xf32> -> vector<512x256xf32>
    %c0_3 = arith.constant 0 : index
    %c0_4 = arith.constant 0 : index
    %3 = vector.load %arg3[%c0_3, %c0_4] : memref<1x256xf32, #tpu.memory_space<vmem>>, vector<1x256xf32>
    %4 = vector.broadcast %3 : vector<1x256xf32> to vector<512x256xf32>
    %5 = arith.addf %2, %4 : vector<512x256xf32>
    %6 = vector.extract_strided_slice %5 {offsets = [0, 0], sizes = [512, 128], strides = [1, 1]} : vector<512x256xf32> to vector<512x128xf32>
    %7 = vector.extract_strided_slice %5 {offsets = [0, 128], sizes = [512, 128], strides = [1, 1]} : vector<512x256xf32> to vector<512x128xf32>
    %cst_5 = arith.constant 0.000000e+00 : f32
    %8 = vector.broadcast %cst_5 : f32 to vector<512x128xf32>
    %9 = arith.subf %8, %7 : vector<512x128xf32>
    %10 = math.exp %9 : vector<512x128xf32>
    %cst_6 = arith.constant 1.000000e+00 : f32
    %11 = vector.broadcast %cst_6 : f32 to vector<512x128xf32>
    %12 = arith.addf %11, %10 : vector<512x128xf32>
    %13 = tpu.reciprocal %12 {approx = true} : vector<512x128xf32> -> vector<512x128xf32>
    %cst_7 = arith.constant 0.000000e+00 : f32
    %14 = vector.broadcast %cst_7 : f32 to vector<512x128xf32>
    %15 = arith.maximumf %6, %14 : vector<512x128xf32>
    %16 = arith.mulf %15, %13 : vector<512x128xf32>
    %c0_8 = arith.constant 0 : index
    %c0_9 = arith.constant 0 : index
    %17 = vector.load %arg4[%c0_8, %c0_9] : memref<512x128xf32, #tpu.memory_space<vmem>>, vector<512x128xf32>
    tpu.vector_store %arg4[%c0_8, %c0_9], %16 {strides = array<i32>} : memref<512x128xf32, #tpu.memory_space<vmem>>, vector<512x128xf32>,
    return
  }
  func.func @transform_0(%arg0: i32) -> (i32, i32) {
    %c0_i32 = arith.constant 0 : i32
    %c0_i32_0 = arith.constant 0 : i32
    return %arg0, %c0_i32 : i32, i32
  }
  func.func @transform_1(%arg0: i32) -> (i32, i32) {
    %c0_i32 = arith.constant 0 : i32
    %c0_i32_0 = arith.constant 0 : i32
    %c0_i32_1 = arith.constant 0 : i32
    return %c0_i32, %c0_i32_0 : i32, i32
  }
  func.func @transform_2(%arg0: i32) -> (i32, i32) {
    %c0_i32 = arith.constant 0 : i32
    %c0_i32_0 = arith.constant 0 : i32
    %c0_i32_1 = arith.constant 0 : i32
    return %c0_i32, %c0_i32_0 : i32, i32
  }
  func.func @transform_3(%arg0: i32) -> (i32, i32) {
    %c0_i32 = arith.constant 0 : i32
    %c0_i32_0 = arith.constant 0 : i32
    return %arg0, %c0_i32 : i32, i32
  }
}

</mosaic_0001>

<bundles_post_ra>
// kernel: tpu_custom_call.1
= control target key start
LH: loop header
LB: loop body
LE: loop exit
PB: predicated region body
PF: predicated region fallthrough
CT: control target
= control target key end

     0   :  { %vm379_vm0 = vcmask 1041408   ;;  %v1666_v4 = vmov 0   ;;  %vm282_vm1 = vcmask 293888   ;;  %s2275_s0 = inlined_call_operand.vmem [shape: bf16[512,36], index: 0, kind: input, shape index: {}]   ;;  %s2276_s1 = inlined_call_operand.vmem [shape: bf16[36,256], index: 1, kind: input, shape index: {}]   ;;  %s2277_s2 = inlined_call_operand.vmem [shape: f32[1,256], index: 2, kind: input, shape index: {}]   ;;  %s2278_s3 = inlined_call_operand.hbm [shape: f32[512,128], index: 3, kind: output, shape index: {}]  }
   0x1   :  { %v84_v0 = vld [vmem:[%s2276_s1 + $0x20] sm:$0x33]  ;;  %v1350_v3 = vld [vmem:[%s2276_s1 + $0x14] ss:$8 sps:$4 sm:$0xff]   ;;  %418 = vmatprep.mubr.bf16.mxu0 %v1666_v4  ;;  %578 = vmatprep.mubr.bf16.mxu1 %v1666_v4  ;;  %v1352_v6 = vld [vmem:[%s2276_s1 + $0x10] ss:$8 sps:$4 sm:$0xff]  }
   0x2   :  { %v1304_v1 = vcombine.high %v84_v0, %v84_v0  ;;  %v1303_v2 = vcombine.low %v84_v0, %v84_v0  ;;  %v1353_v7 = vld [vmem:[%s2276_s1 + $0x4] ss:$8 sps:$4 sm:$0xff]   ;;  %v1355_v8 = vld [vmem:[%s2276_s1] ss:$8 sps:$4 sm:$0xff]   ;;  %v1360_v13 = vld [vmem:[%s2275_s0 + $0x10] sm:$0xff]  }
   0x3   :  { %v1356_v9 = vld [vmem:[%s2275_s0] sm:$0xff]   ;;  %v1358_v11 = vld [vmem:[%s2275_s0 + $0x8] sm:$0xff]   ;;  %v1361_v14 = vld [vmem:[%s2275_s0 + $0x90] sm:$0xff]  }
   0x4   :  { %1305 = vmatprep.subr.msk.bf16.mxu0 %vm379_vm0, %v1304_v1  ;;  %1338 = vmatprep.subr.msk.bf16.mxu1 %vm379_vm0, %v1304_v1  ;;  %v381_v5 = vsel %vm379_vm0, %v1303_v2, 0  ;;  %v1357_v10 = vld [vmem:[%s2275_s0 + $0x80] sm:$0xff]   ;;  %v1359_v12 = vld [vmem:[%s2275_s0 + $0x88] sm:$0xff]   ;;  %v1362_v15 = vld [vmem:[%s2275_s0 + $0x18] sm:$0xff]  }
   0x5   :  { %397 = vmatpush1.bf16.msra.mxu0 %v381_v5  ;;  %1341 = vmatpush1.bf16.msra.mxu1 %v381_v5  ;;  %v1363_v16 = vld [vmem:[%s2275_s0 + $0x98] sm:$0xff]  }
   0x6   :  { %398 = vmatprep.subr.bf16.mxu0 %v1350_v3  ;;  %1339 = vmatprep.subr.bf16.mxu1 %v1350_v3 }
   0x9   :  { %399 = vmatpush1.bf16.msra.mxu0 %v1352_v6  ;;  %1342 = vmatpush1.bf16.msra.mxu1 %v1352_v6 }
   0xa   :  { %400 = vmatprep.subr.bf16.mxu0 %v1353_v7  ;;  %1340 = vmatprep.subr.bf16.mxu1 %v1353_v7 }
   0xd   :  { %401 = vmatpush1.bf16.msra.mxu0 %v1355_v8  ;;  %1343 = vmatpush1.bf16.msra.mxu1 %v1355_v8 }
  0x10   :  { %1306 = vmatmul.mubr.msk.bf16.vlgmr.msra.gmra.mxu0 %vm282_vm1, %v1356_v9  ;;  %1322 = vmatmul.mubr.msk.bf16.vlgmr.msra.gmra.mxu1 %vm282_vm1, %v1357_v10 }
  0x11   :  { %428 = vmatprep.mubr.bf16.mxu0 %v1666_v4  ;;  %588 = vmatprep.mubr.bf16.mxu1 %v1666_v4 }
  0x18   :  { %1307 = vmatmul.mubr.msk.bf16.gmra.mxu0 %vm282_vm1, %v1358_v11  ;;  %1323 = vmatmul.mubr.msk.bf16.gmra.mxu1 %vm282_vm1, %v1359_v12 }
  0x19   :  { %438 = vmatprep.mubr.bf16.mxu0 %v1666_v4  ;;  %598 = vmatprep.mubr.bf16.mxu1 %v1666_v4 }
  0x20   :  { %1308 = vmatmul.mubr.msk.bf16.gmra.mxu0 %vm282_vm1, %v1360_v13  ;;  %1324 = vmatmul.mubr.msk.bf16.gmra.mxu1 %vm282_vm1, %v1361_v14 }
  0x21   :  { %448 = vmatprep.mubr.bf16.mxu0 %v1666_v4  ;;  %608 = vmatprep.mubr.bf16.mxu1 %v1666_v4 }
  0x22   :  { %8 = vsyncpa [#allocation3], 0  ;;  %v1364_v17 = vld [vmem:[%s2275_s0 + $0x20] sm:$0xff]   ;;  %v1366_v19 = vld [vmem:[%s2275_s0 + $0x28] sm:$0xff]   ;;  %v87_v41 = vlaneseq }
  0x23   :  { %v1365_v18 = vld [vmem:[%s2275_s0 + $0xa0] sm:$0xff]   ;;  %v1367_v20 = vld [vmem:[%s2275_s0 + $0xa8] sm:$0xff]   ;;  %v1368_v21 = vld [vmem:[%s2275_s0 + $0x30] sm:$0xff]  }
  0x24   :  { %v1369_v22 = vld [vmem:[%s2275_s0 + $0xb0] sm:$0xff]   ;;  %v1370_v23 = vld [vmem:[%s2275_s0 + $0x38] sm:$0xff]   ;;  %v1372_v25 = vld [vmem:[%s2275_s0 + $0x40] sm:$0xff]   ;;  %v1865_v42 = vshrl.u32 %v87_v41, 7 }
  0x25   :  { %v1371_v24 = vld [vmem:[%s2275_s0 + $0xb8] sm:$0xff]   ;;  %v1373_v26 = vld [vmem:[%s2275_s0 + $0xc0] sm:$0xff]   ;;  %v1374_v27 = vld [vmem:[%s2275_s0 + $0x48] sm:$0xff]  }
  0x26   :  { %v1375_v28 = vld [vmem:[%s2275_s0 + $0xc8] sm:$0xff]   ;;  %v1376_v29 = vld [vmem:[%s2275_s0 + $0x50] sm:$0xff]   ;;  %v1378_v31 = vld [vmem:[%s2275_s0 + $0x58] sm:$0xff]   ;;  %v93_v43 = vsub.s32 1, %v1865_v42 }
  0x27   :  { %v1377_v30 = vld [vmem:[%s2275_s0 + $0xd0] sm:$0xff]   ;;  %v1379_v32 = vld [vmem:[%s2275_s0 + $0xd8] sm:$0xff]   ;;  %v1380_v33 = vld [vmem:[%s2275_s0 + $0x60] sm:$0xff]  }
  0x28   :  { %1309 = vmatmul.mubr.msk.bf16.gmra.mxu0 %vm282_vm1, %v1362_v15  ;;  %1325 = vmatmul.mubr.msk.bf16.gmra.mxu1 %vm282_vm1, %v1363_v16  ;;  %v1381_v34 = vld [vmem:[%s2275_s0 + $0xe0] sm:$0xff]   ;;  %v1382_v35 = vld [vmem:[%s2275_s0 + $0x68] sm:$0xff]   ;;  %v1384_v37 = vld [vmem:[%s2275_s0 + $0x70] sm:$0xff]  }
  0x29   :  { %458 = vmatprep.mubr.bf16.mxu0 %v1666_v4  ;;  %618 = vmatprep.mubr.bf16.mxu1 %v1666_v4  ;;  %v1383_v36 = vld [vmem:[%s2275_s0 + $0xe8] sm:$0xff]   ;;  %v1385_v38 = vld [vmem:[%s2275_s0 + $0xf0] sm:$0xff]   ;;  %v1386_v39 = vld [vmem:[%s2275_s0 + $0x78] sm:$0xff]  }
  0x2a   :  { %v1387_v40 = vld [vmem:[%s2275_s0 + $0xf8] sm:$0xff]   ;;  %v1871_v44 = vld [vmem:[%s2277_s2] sm:$0x3]  ;;  %s1667_s0 = smov [#allocation2]  }
  0x2b   :  { %v1874_v45 = vrot.slane %v1871_v44, %v93_v43  ;;  %s1256_s2 = sshll.u32 %s1667_s0, 4  ;;  %s1257_s2 = int_to_ptr.vmem [resolvable:$true] %s1256_s2 }
  0x2c   :  { %s1644_s4 = scalar_lea.vmem %s1257_s2, 8192  ;;  %p1649_p1 = scmp.lt.s32.totalorder %s1257_s2, %s1257_s2 }
  0x2d   :  { %p1645_p0 = scmp.ne.s32.totalorder %s1257_s2, %s1644_s4  ;;  %p1650_p2 = scmp.lt.s32.totalorder %s1644_s4, %s1644_s4 }
  0x2f   :  { %p1651_p3 = por %p1650_p2, %p1649_p1 }
  0x30   :  { %1310 = vmatmul.mubr.msk.bf16.gmra.mxu0 %vm282_vm1, %v1364_v17  ;;  %1326 = vmatmul.mubr.msk.bf16.gmra.mxu1 %vm282_vm1, %v1365_v18 }
  0x31   :  { %468 = vmatprep.mubr.bf16.mxu0 %v1666_v4  ;;  %628 = vmatprep.mubr.bf16.mxu1 %v1666_v4  ;;  %p1652_p4 = pnand %p1651_p3, %p1645_p0 }
  0x38   :  { %1311 = vmatmul.mubr.msk.bf16.gmra.mxu0 %vm282_vm1, %v1366_v19  ;;  %1327 = vmatmul.mubr.msk.bf16.gmra.mxu1 %vm282_vm1, %v1367_v20 }
  0x39   :  { %478 = vmatprep.mubr.bf16.mxu0 %v1666_v4  ;;  %638 = vmatprep.mubr.bf16.mxu1 %v1666_v4 }
  0x40   :  { %1312 = vmatmul.mubr.msk.bf16.gmra.mxu0 %vm282_vm1, %v1368_v21  ;;  %1328 = vmatmul.mubr.msk.bf16.gmra.mxu1 %vm282_vm1, %v1369_v22 }
  0x41   :  { %488 = vmatprep.mubr.bf16.mxu0 %v1666_v4  ;;  %648 = vmatprep.mubr.bf16.mxu1 %v1666_v4 }
  0x48   :  { %1313 = vmatmul.mubr.msk.bf16.gmra.mxu0 %vm282_vm1, %v1370_v23  ;;  %1329 = vmatmul.mubr.msk.bf16.gmra.mxu1 %vm282_vm1, %v1371_v24 }
  0x49   :  { %498 = vmatprep.mubr.bf16.mxu0 %v1666_v4  ;;  %658 = vmatprep.mubr.bf16.mxu1 %v1666_v4 }
  0x50   :  { %1314 = vmatmul.mubr.msk.bf16.gmra.mxu0 %vm282_vm1, %v1372_v25  ;;  %1330 = vmatmul.mubr.msk.bf16.gmra.mxu1 %vm282_vm1, %v1373_v26 }
  0x51   :  { %508 = vmatprep.mubr.bf16.mxu0 %v1666_v4  ;;  %668 = vmatprep.mubr.bf16.mxu1 %v1666_v4 }
  0x58   :  { %1315 = vmatmul.mubr.msk.bf16.gmra.mxu0 %vm282_vm1, %v1374_v27  ;;  %1331 = vmatmul.mubr.msk.bf16.gmra.mxu1 %vm282_vm1, %v1375_v28 }
  0x59   :  { %518 = vmatprep.mubr.bf16.mxu0 %v1666_v4  ;;  %678 = vmatprep.mubr.bf16.mxu1 %v1666_v4 }
  0x60   :  { %1316 = vmatmul.mubr.msk.bf16.gmra.mxu0 %vm282_vm1, %v1376_v29  ;;  %1332 = vmatmul.mubr.msk.bf16.gmra.mxu1 %vm282_vm1, %v1377_v30 }
  0x61   :  { %528 = vmatprep.mubr.bf16.mxu0 %v1666_v4  ;;  %688 = vmatprep.mubr.bf16.mxu1 %v1666_v4 }
  0x68   :  { %1317 = vmatmul.mubr.msk.bf16.gmra.mxu0 %vm282_vm1, %v1378_v31  ;;  %1333 = vmatmul.mubr.msk.bf16.gmra.mxu1 %vm282_vm1, %v1379_v32 }
  0x69   :  { %538 = vmatprep.mubr.bf16.mxu0 %v1666_v4  ;;  %698 = vmatprep.mubr.bf16.mxu1 %v1666_v4 }
  0x70   :  { %1318 = vmatmul.mubr.msk.bf16.gmra.mxu0 %vm282_vm1, %v1380_v33  ;;  %1334 = vmatmul.mubr.msk.bf16.gmra.mxu1 %vm282_vm1, %v1381_v34  ;;  %v89_v33 = vsub.s32 0, %v1865_v42 }
  0x71   :  { %548 = vmatprep.mubr.bf16.mxu0 %v1666_v4  ;;  %708 = vmatprep.mubr.bf16.mxu1 %v1666_v4 }
  0x72   :  { %v1918_v42 = vrot.slane %v1871_v44, %v89_v33 }
  0x78   :  { %1319 = vmatmul.mubr.msk.bf16.gmra.mxu0 %vm282_vm1, %v1382_v35  ;;  %1335 = vmatmul.mubr.msk.bf16.gmra.mxu1 %vm282_vm1, %v1383_v36 }
  0x79   :  { %558 = vmatprep.mubr.bf16.mxu0 %v1666_v4  ;;  %718 = vmatprep.mubr.bf16.mxu1 %v1666_v4 }
  0x80   :  { %1320 = vmatmul.mubr.msk.bf16.gmra.mxu0 %vm282_vm1, %v1384_v37  ;;  %1336 = vmatmul.mubr.msk.bf16.gmra.mxu1 %vm282_vm1, %v1385_v38 }
  0x81   :  { %568 = vmatprep.mubr.bf16.mxu0 %v1666_v4  ;;  %728 = vmatprep.mubr.bf16.mxu1 %v1666_v4 }
  0x88   :  { %1321 = vmatmul.mubr.msk.bf16.gmra.mxu0 %vm282_vm1, %v1386_v39  ;;  %1337 = vmatmul.mubr.msk.bf16.gmra.mxu1 %vm282_vm1, %v1387_v40 }
  0xd0   :  { %v1876_v46 = vpop.f32.mrf.mxu0  ;;  %v1878_v47 = vpop.f32.mrf.mxu1 }
  0xd2   :  { %v422_v48 = vpop.f32.mrf.mxu0  ;;  %v582_v49 = vpop.f32.mrf.mxu1 }
  0xd3   :  { %v423_v50 = vadd.f32 %v422_v48, %v1874_v45  ;;  %v583_v51 = vadd.f32 %v582_v49, %v1874_v45 }
  0xd4   :  { %v1882_v52 = vpop.f32.mrf.mxu0  ;;  %v1884_v53 = vpop.f32.mrf.mxu1 }
  0xd5   :  { %v739_v54 = vsub.f32 0.0, %v423_v50  ;;  %v771_v55 = vsub.f32 0.0, %v583_v51 }
  0xd6   :  { %v426_v56 = vpop.f32.mrf.mxu0  ;;  %v586_v57 = vpop.f32.mrf.mxu1 }
  0xd7   :  { %v803_v58 = vmul.f32 1.442695, %v739_v54  ;;  %v867_v59 = vmul.f32 1.442695, %v771_v55  ;;  %v427_v60 = vadd.f32 %v426_v56, %v1874_v45  ;;  %v587_v61 = vadd.f32 %v586_v57, %v1874_v45 }
  0xd8   :  { %v1888_v62 = vpop.f32.mrf.mxu0  ;;  %v1890_v63 = vpop.f32.mrf.mxu1 }
  0xd9   :  { %1388 = vpow2.f32 %v803_v58  ;;  %v740_v0 = vsub.f32 0.0, %v427_v60  ;;  %v772_v1 = vsub.f32 0.0, %v587_v61 }
  0xda   :  { %1390 = vpow2.f32 %v867_v59  ;;  %v432_v2 = vpop.f32.mrf.mxu0  ;;  %v592_v3 = vpop.f32.mrf.mxu1 }
  0xdb   :  { %v433_v4 = vadd.f32 %v432_v2, %v1874_v45  ;;  %v593_v5 = vadd.f32 %v592_v3, %v1874_v45  ;;  %v805_v6 = vmul.f32 1.442695, %v740_v0  ;;  %v869_v7 = vmul.f32 1.442695, %v772_v1 }
  0xdc   :  { %v1894_v8 = vpop.f32.mrf.mxu0  ;;  %v1896_v9 = vpop.f32.mrf.mxu1  ;;  %v421_v3 = vadd.f32 %v1876_v46, %v1918_v42 }
  0xdd   :  { %v741_v10 = vsub.f32 0.0, %v433_v4  ;;  %v773_v11 = vsub.f32 0.0, %v593_v5  ;;  %1392 = vpow2.f32 %v805_v6  ;;  %v581_v4 = vadd.f32 %v1878_v47, %v1918_v42 }
  0xde   :  { %v436_v12 = vpop.f32.mrf.mxu0  ;;  %v596_v13 = vpop.f32.mrf.mxu1  ;;  %1394 = vpow2.f32 %v869_v7 }
  0xdf   :  { %v807_v14 = vmul.f32 1.442695, %v741_v10  ;;  %v871_v15 = vmul.f32 1.442695, %v773_v11  ;;  %v437_v16 = vadd.f32 %v436_v12, %v1874_v45  ;;  %v597_v17 = vadd.f32 %v596_v13, %v1874_v45 }
  0xe0   :  { %v1900_v18 = vpop.f32.mrf.mxu0  ;;  %v1902_v19 = vpop.f32.mrf.mxu1 }
  0xe1   :  { %1396 = vpow2.f32 %v807_v14  ;;  %v742_v20 = vsub.f32 0.0, %v437_v16  ;;  %v774_v21 = vsub.f32 0.0, %v597_v17  ;;  %v1932_v14 = vadd.f32 %v1882_v52, %v1918_v42 }
  0xe2   :  { %1398 = vpow2.f32 %v871_v15  ;;  %v442_v22 = vpop.f32.mrf.mxu0  ;;  %v602_v23 = vpop.f32.mrf.mxu1 }
  0xe3   :  { %v443_v24 = vadd.f32 %v442_v22, %v1874_v45  ;;  %v603_v25 = vadd.f32 %v602_v23, %v1874_v45  ;;  %v809_v26 = vmul.f32 1.442695, %v742_v20  ;;  %v873_v27 = vmul.f32 1.442695, %v774_v21 }
  0xe4   :  { %v1906_v28 = vpop.f32.mrf.mxu0  ;;  %v1908_v29 = vpop.f32.mrf.mxu1  ;;  %v1059_v22 = vmax.f32 %v421_v3, 0.0  ;;  %v1942_v23 = vadd.f32 %v1884_v53, %v1918_v42  ;;  %v1060_v33 = vmax.f32 %v1932_v14, 0.0 }
  0xe5   :  { %v743_v30 = vsub.f32 0.0, %v443_v24  ;;  %v775_v31 = vsub.f32 0.0, %v603_v25  ;;  %1400 = vpow2.f32 %v809_v26 }
  0xe6   :  { %v1389_v32 = vpop.eup %1388  ;;  %v446_v34 = vpop.f32.mrf.mxu0  ;;  %1402 = vpow2.f32 %v873_v27 }
  0xe7   :  { %v606_v35 = vpop.f32.mrf.mxu1  ;;  %v1391_v36 = vpop.eup %1390  ;;  %v931_v37 = vadd.f32 1.0, %v1389_v32  ;;  %v811_v38 = vmul.f32 1.442695, %v743_v30  ;;  %v875_v40 = vmul.f32 1.442695, %v775_v31  ;;  %v447_v41 = vadd.f32 %v446_v34, %v1874_v45 }
  0xe8   :  { %v963_v39 = vadd.f32 1.0, %v1391_v36  ;;  %v1912_v43 = vpop.f32.mrf.mxu0  ;;  %v607_v49 = vadd.f32 %v606_v35, %v1874_v45  ;;  %v1091_v32 = vmax.f32 %v581_v4, 0.0  ;;  %v591_v4 = vadd.f32 %v1890_v63, %v1918_v42 }
  0xe9   :  { %v1914_v48 = vpop.f32.mrf.mxu1  ;;  %1404 = vrcp.f32 %v931_v37  ;;  %v744_v50 = vsub.f32 0.0, %v447_v41 }
  0xea   :  { %1406 = vrcp.f32 %v963_v39  ;;  %v452_v51 = vpop.f32.mrf.mxu0  ;;  %v1393_v55 = vpop.eup %1392  ;;  %v776_v56 = vsub.f32 0.0, %v607_v49 }
  0xeb   :  { %v612_v54 = vpop.f32.mrf.mxu1  ;;  %1408 = vpow2.f32 %v811_v38  ;;  %v1395_v57 = vpop.eup %1394  ;;  %v932_v58 = vadd.f32 1.0, %v1393_v55  ;;  %v813_v59 = vmul.f32 1.442695, %v744_v50  ;;  %v453_v60 = vadd.f32 %v452_v51, %v1874_v45 }
  0xec   :  { %1410 = vpow2.f32 %v875_v40  ;;  %v1921_v61 = vpop.f32.mrf.mxu0  ;;  %v964_v1 = vadd.f32 1.0, %v1395_v57  ;;  %v613_v44 = vadd.f32 %v612_v54, %v1874_v45  ;;  %v877_v12 = vmul.f32 1.442695, %v776_v56 }
  0xed   :  { %v1923_v0 = vpop.f32.mrf.mxu1  ;;  %1412 = vrcp.f32 %v932_v58  ;;  %v745_v5 = vsub.f32 0.0, %v453_v60  ;;  %v1092_v40 = vmax.f32 %v1942_v23, 0.0  ;;  %v431_v56 = vadd.f32 %v1888_v62, %v1918_v42 }
  0xee   :  { %v1397_v2 = vpop.eup %1396  ;;  %v456_v6 = vpop.f32.mrf.mxu0  ;;  %1414 = vrcp.f32 %v964_v1  ;;  %v777_v13 = vsub.f32 0.0, %v613_v44  ;;  %v1963_v62 = vadd.f32 %v1894_v8, %v1918_v42 }
  0xef   :  { %v616_v7 = vpop.f32.mrf.mxu1  ;;  %v1399_v10 = vpop.eup %1398  ;;  %v933_v11 = vadd.f32 1.0, %v1397_v2  ;;  %1416 = vpow2.f32 %v813_v59  ;;  %v815_v16 = vmul.f32 1.442695, %v745_v5  ;;  %v457_v20 = vadd.f32 %v456_v6, %v1874_v45 }
  0xf0   :  { %v965_v15 = vadd.f32 1.0, %v1399_v10  ;;  %v1934_v46 = vpop.f32.mrf.mxu0  ;;  %v879_v47 = vmul.f32 1.442695, %v777_v13  ;;  %v617_v21 = vadd.f32 %v616_v7, %v1874_v45  ;;  %v1061_v14 = vmax.f32 %v431_v56, 0.0 }
  0xf1   :  { %v1936_v17 = vpop.f32.mrf.mxu1  ;;  %1418 = vrcp.f32 %v933_v11  ;;  %v746_v26 = vsub.f32 0.0, %v457_v20 }
  0xf2   :  { %1420 = vrcp.f32 %v965_v15  ;;  %v462_v52 = vpop.f32.mrf.mxu0  ;;  %v1401_v25 = vpop.eup %1400  ;;  %v778_v27 = vsub.f32 0.0, %v617_v21  ;;  %v1967_v15 = vadd.f32 %v1896_v9, %v1918_v42 }
  0xf3   :  { %v622_v24 = vpop.f32.mrf.mxu1  ;;  %1422 = vpow2.f32 %v877_v12  ;;  %v463_v30 = vadd.f32 %v462_v52, %v1874_v45  ;;  %v1403_v31 = vpop.eup %1402  ;;  %v934_v34 = vadd.f32 1.0, %v1401_v25  ;;  %v817_v37 = vmul.f32 1.442695, %v746_v26 }
  0xf4   :  { %1424 = vpow2.f32 %v815_v16  ;;  %v1946_v35 = vpop.f32.mrf.mxu0  ;;  %v966_v53 = vadd.f32 1.0, %v1403_v31  ;;  %v881_v38 = vmul.f32 1.442695, %v778_v27  ;;  %v623_v49 = vadd.f32 %v622_v24, %v1874_v45 }
  0xf5   :  { %v1948_v36 = vpop.f32.mrf.mxu1  ;;  %1426 = vpow2.f32 %v879_v47  ;;  %v747_v41 = vsub.f32 0.0, %v463_v30  ;;  %v1093_v24 = vmax.f32 %v591_v4, 0.0  ;;  %v1062_v26 = vmax.f32 %v1963_v62, 0.0 }
  0xf6   :  { %v1405_v39 = vpop.eup %1404  ;;  %1428 = vrcp.f32 %v934_v34  ;;  %v466_v50 = vpop.f32.mrf.mxu0  ;;  %v779_v1 = vsub.f32 0.0, %v623_v49 }
  0xf7   :  { %v626_v51 = vpop.f32.mrf.mxu1  ;;  %v1407_v54 = vpop.eup %1406  ;;  %v1123_v55 = vmul.f32 %v1405_v39, %v1059_v22  ;;  %1430 = vrcp.f32 %v966_v53  ;;  %v467_v57 = vadd.f32 %v466_v50, %v1874_v45  ;;  %v819_v60 = vmul.f32 1.442695, %v747_v41 }
  0xf8   :  { %v1409_v58 = vpop.eup %1408  ;;  %v1155_v59 = vmul.f32 %v1407_v54, %v1091_v32  ;;  %1432 = vpow2.f32 %v817_v37  ;;  %v1955_v44 = vpop.f32.mrf.mxu0  ;;  %v883_v7 = vmul.f32 1.442695, %v779_v1  ;;  %v627_v63 = vadd.f32 %v626_v51, %v1874_v45 }
  0xf9   :  { %v1957_v2 = vpop.f32.mrf.mxu1  ;;  %v1411_v3 = vpop.eup %1410  ;;  %1187 = vst [vmem:[#allocation2] sm:$0xff] %v1123_v55  ;;  %v935_v5 = vadd.f32 1.0, %v1409_v58  ;;  %1434 = vpow2.f32 %v881_v38  ;;  %v748_v10 = vsub.f32 0.0, %v467_v57  ;;  %v1094_v53 = vmax.f32 %v1967_v15, 0.0 }
  0xfa   :  { %1219 = vst [vmem:[#allocation2 + $0x100] sm:$0xff] %v1155_v59  ;;  %v967_v6 = vadd.f32 1.0, %v1411_v3  ;;  %1436 = vpow2.f32 %v819_v60  ;;  %v472_v11 = vpop.f32.mrf.mxu0  ;;  %v1413_v13 = vpop.eup %1412  ;;  %v780_v25 = vsub.f32 0.0, %v627_v63  ;;  %v441_v41 = vadd.f32 %v1900_v18, %v1918_v42 }
  0xfb   :  { %v632_v12 = vpop.f32.mrf.mxu1  ;;  %1438 = vrcp.f32 %v935_v5  ;;  %v1415_v8 = vpop.eup %1414  ;;  %v1124_v16 = vmul.f32 %v1413_v13, %v1060_v33  ;;  %v821_v47 = vmul.f32 1.442695, %v748_v10  ;;  %v473_v20 = vadd.f32 %v472_v11, %v1874_v45 }
  0xfc   :  { %1440 = vrcp.f32 %v967_v6  ;;  %v1971_v21 = vpop.f32.mrf.mxu0  ;;  %v1417_v23 = vpop.eup %1416  ;;  %v1156_v52 = vmul.f32 %v1415_v8, %v1092_v40  ;;  %v885_v37 = vmul.f32 1.442695, %v780_v25  ;;  %v633_v38 = vadd.f32 %v632_v12, %v1874_v45 }
  0xfd   :  { %v1973_v22 = vpop.f32.mrf.mxu1  ;;  %1442 = vpow2.f32 %v883_v7  ;;  %1188 = vst [vmem:[#allocation2 + $0x8] sm:$0xff] %v1124_v16  ;;  %v936_v27 = vadd.f32 1.0, %v1417_v23  ;;  %v749_v30 = vsub.f32 0.0, %v473_v20  ;;  %v601_v55 = vadd.f32 %v1902_v19, %v1918_v42 }
  0xfe   :  { %v1419_v9 = vpop.eup %1418  ;;  %1444 = vpow2.f32 %v821_v47  ;;  %v476_v31 = vpop.f32.mrf.mxu0  ;;  %1220 = vst [vmem:[#allocation2 + $0x108] sm:$0xff] %v1156_v52  ;;  %v781_v57 = vsub.f32 0.0, %v633_v38  ;;  %v1988_v59 = vadd.f32 %v1906_v28, %v1918_v42  ;;  %v1063_v10 = vmax.f32 %v441_v41, 0.0 }
  0xff   :  { %v636_v32 = vpop.f32.mrf.mxu1  ;;  %v1421_v33 = vpop.eup %1420  ;;  %v1125_v34 = vmul.f32 %v1419_v9, %v1061_v14  ;;  %1446 = vrcp.f32 %v936_v27  ;;  %v823_v49 = vmul.f32 1.442695, %v749_v30  ;;  %v477_v60 = vadd.f32 %v476_v31, %v1874_v45 }
 0x100   :  { %v1423_v39 = vpop.eup %1422  ;;  %v1157_v40 = vmul.f32 %v1421_v33, %v1093_v24  ;;  %v1980_v50 = vpop.f32.mrf.mxu0  ;;  %1448 = vpow2.f32 %v885_v37  ;;  %v887_v5 = vmul.f32 1.442695, %v781_v57  ;;  %v637_v19 = vadd.f32 %v636_v32, %v1874_v45 }
 0x101   :  { %v1982_v51 = vpop.f32.mrf.mxu1  ;;  %v1425_v54 = vpop.eup %1424  ;;  %1189 = vst [vmem:[#allocation2 + $0x10] sm:$0xff] %v1125_v34  ;;  %v968_v56 = vadd.f32 1.0, %v1423_v39  ;;  %1450 = vpow2.f32 %v823_v49  ;;  %v750_v11 = vsub.f32 0.0, %v477_v60  ;;  %v1095_v15 = vmax.f32 %v601_v55, 0.0 }
 0x102   :  { %v1427_v58 = vpop.eup %1426  ;;  %1221 = vst [vmem:[#allocation2 + $0x110] sm:$0xff] %v1157_v40  ;;  %v937_v18 = vadd.f32 1.0, %v1425_v54  ;;  %v482_v1 = vpop.f32.mrf.mxu0  ;;  %v782_v63 = vsub.f32 0.0, %v637_v19  ;;  %v1064_v16 = vmax.f32 %v1988_v59, 0.0  ;;  %v1999_v47 = vadd.f32 %v1908_v29, %v1918_v42 }
 0x103   :  { %v642_v3 = vpop.f32.mrf.mxu1  ;;  %v1429_v4 = vpop.eup %1428  ;;  %1452 = vrcp.f32 %v968_v56  ;;  %v969_v62 = vadd.f32 1.0, %v1427_v58  ;;  %v2003_v25 = vadd.f32 %v1912_v43, %v1918_v42  ;;  %v483_v27 = vadd.f32 %v482_v1, %v1874_v45 }
 0x104   :  { %v1431_v6 = vpop.eup %1430  ;;  %v1126_v7 = vmul.f32 %v1429_v4, %v1062_v26  ;;  %1454 = vrcp.f32 %v937_v18  ;;  %v1992_v12 = vpop.f32.mrf.mxu0  ;;  %v825_v26 = vmul.f32 1.442695, %v750_v11  ;;  %v889_v32 = vmul.f32 1.442695, %v782_v63 }
 0x105   :  { %v1994_v28 = vpop.f32.mrf.mxu1  ;;  %v1433_v13 = vpop.eup %1432  ;;  %v1158_v14 = vmul.f32 %v1431_v6, %v1094_v53  ;;  %1456 = vrcp.f32 %v969_v62  ;;  %v643_v29 = vadd.f32 %v642_v3, %v1874_v45  ;;  %v2013_v43 = vadd.f32 %v1914_v48, %v1918_v42 }
 0x106   :  { %v1435_v8 = vpop.eup %1434  ;;  %1190 = vst [vmem:[#allocation2 + $0x18] sm:$0xff] %v1126_v7  ;;  %v938_v20 = vadd.f32 1.0, %v1433_v13  ;;  %1458 = vpow2.f32 %v887_v5  ;;  %v486_v23 = vpop.f32.mrf.mxu0  ;;  %v751_v38 = vsub.f32 0.0, %v483_v27  ;;  %v1096_v41 = vmax.f32 %v1999_v47, 0.0 }
 0x107   :  { %v646_v52 = vpop.f32.mrf.mxu1  ;;  %v1437_v24 = vpop.eup %1436  ;;  %1222 = vst [vmem:[#allocation2 + $0x118] sm:$0xff] %v1158_v14  ;;  %v970_v9 = vadd.f32 1.0, %v1435_v8  ;;  %v783_v49 = vsub.f32 0.0, %v643_v29  ;;  %v2018_v57 = vadd.f32 %v1921_v61, %v1918_v42  ;;  %v487_v60 = vadd.f32 %v486_v23, %v1874_v45 }
 0x108   :  { %v1439_v30 = vpop.eup %1438  ;;  %1460 = vrcp.f32 %v938_v20  ;;  %v939_v31 = vadd.f32 1.0, %v1437_v24  ;;  %v2007_v33 = vpop.f32.mrf.mxu0  ;;  %v827_v48 = vmul.f32 1.442695, %v751_v38  ;;  %v1065_v62 = vmax.f32 %v2003_v25, 0.0 }
 0x109   :  { %v2009_v34 = vpop.f32.mrf.mxu1  ;;  %v1441_v53 = vpop.eup %1440  ;;  %v1127_v37 = vmul.f32 %v1439_v30, %v1063_v10  ;;  %1462 = vrcp.f32 %v970_v9  ;;  %v891_v18 = vmul.f32 1.442695, %v783_v49  ;;  %v1097_v5 = vmax.f32 %v2013_v43, 0.0 }
 0x10a   :  { %v1443_v39 = vpop.eup %1442  ;;  %v1159_v40 = vmul.f32 %v1441_v53, %v1095_v15  ;;  %1464 = vrcp.f32 %v939_v31  ;;  %v492_v54 = vpop.f32.mrf.mxu0  ;;  %v647_v61 = vadd.f32 %v646_v52, %v1874_v45  ;;  %v752_v7 = vsub.f32 0.0, %v487_v60 }
 0x10b   :  { %v652_v55 = vpop.f32.mrf.mxu1  ;;  %v1445_v56 = vpop.eup %1444  ;;  %1191 = vst [vmem:[#allocation2 + $0x20] sm:$0xff] %v1127_v37  ;;  %v971_v58 = vadd.f32 1.0, %v1443_v39  ;;  %1466 = vpow2.f32 %v825_v26  ;;  %v493_v10 = vadd.f32 %v492_v54, %v1874_v45  ;;  %v615_v15 = vadd.f32 %v1923_v0, %v1918_v42 }
 0x10c   :  { %1223 = vst [vmem:[#allocation2 + $0x120] sm:$0xff] %v1159_v40  ;;  %v940_v59 = vadd.f32 1.0, %v1445_v56  ;;  %1468 = vpow2.f32 %v889_v32  ;;  %v2021_v1 = vpop.f32.mrf.mxu0  ;;  %v1447_v4 = vpop.eup %1446  ;;  %v784_v8 = vsub.f32 0.0, %v647_v61  ;;  %v1066_v20 = vmax.f32 %v2018_v57, 0.0 }
 0x10d   :  { %v2023_v3 = vpop.f32.mrf.mxu1  ;;  %1470 = vrcp.f32 %v971_v58  ;;  %v1449_v19 = vpop.eup %1448  ;;  %v1128_v6 = vmul.f32 %v1447_v4, %v1064_v16  ;;  %v829_v16 = vmul.f32 1.442695, %v752_v7  ;;  %v753_v27 = vsub.f32 0.0, %v493_v10 }
 0x10e   :  { %1472 = vrcp.f32 %v940_v59  ;;  %v496_v11 = vpop.f32.mrf.mxu0  ;;  %v1451_v14 = vpop.eup %1450  ;;  %v972_v63 = vadd.f32 1.0, %v1449_v19  ;;  %v893_v26 = vmul.f32 1.442695, %v784_v8  ;;  %v461_v31 = vadd.f32 %v1934_v46, %v1918_v42 }
 0x10f   :  { %v656_v13 = vpop.f32.mrf.mxu1  ;;  %1474 = vpow2.f32 %v827_v48  ;;  %1192 = vst [vmem:[#allocation2 + $0x28] sm:$0xff] %v1128_v6  ;;  %v941_v23 = vadd.f32 1.0, %v1451_v14  ;;  %v653_v32 = vadd.f32 %v652_v55, %v1874_v45  ;;  %v621_v38 = vadd.f32 %v1936_v17, %v1918_v42 }
 0x110   :  { %v1453_v47 = vpop.eup %1452  ;;  %1476 = vpow2.f32 %v891_v18  ;;  %v2032_v52 = vpop.f32.mrf.mxu0  ;;  %v831_v39 = vmul.f32 1.442695, %v753_v27  ;;  %v1098_v40 = vmax.f32 %v615_v15, 0.0  ;;  %v465_v56 = vadd.f32 %v1946_v35, %v1918_v42 }
 0x111   :  { %v2034_v24 = vpop.f32.mrf.mxu1  ;;  %v1455_v25 = vpop.eup %1454  ;;  %v1160_v9 = vmul.f32 %v1453_v47, %v1096_v41  ;;  %1478 = vrcp.f32 %v972_v63  ;;  %v785_v49 = vsub.f32 0.0, %v653_v32  ;;  %v497_v57 = vadd.f32 %v496_v11, %v1874_v45 }
 0x112   :  { %v1457_v0 = vpop.eup %1456  ;;  %v1129_v30 = vmul.f32 %v1455_v25, %v1065_v62  ;;  %1480 = vrcp.f32 %v941_v23  ;;  %v502_v29 = vpop.f32.mrf.mxu0  ;;  %v657_v17 = vadd.f32 %v656_v13, %v1874_v45  ;;  %v1067_v59 = vmax.f32 %v461_v31, 0.0 }
 0x113   :  { %v662_v53 = vpop.f32.mrf.mxu1  ;;  %v1459_v37 = vpop.eup %1458  ;;  %1224 = vst [vmem:[#allocation2 + $0x128] sm:$0xff] %v1160_v9  ;;  %v1161_v43 = vmul.f32 %v1457_v0, %v1097_v5  ;;  %1482 = vpow2.f32 %v829_v16  ;;  %v895_v18 = vmul.f32 1.442695, %v785_v49  ;;  %v1099_v61 = vmax.f32 %v621_v38, 0.0 }
 0x114   :  { %1193 = vst [vmem:[#allocation2 + $0x30] sm:$0xff] %v1129_v30  ;;  %v973_v41 = vadd.f32 1.0, %v1459_v37  ;;  %1484 = vpow2.f32 %v893_v26  ;;  %v2041_v54 = vpop.f32.mrf.mxu0  ;;  %v754_v19 = vsub.f32 0.0, %v497_v57  ;;  %v786_v6 = vsub.f32 0.0, %v657_v17 }
 0x115   :  { %v2043_v46 = vpop.f32.mrf.mxu1  ;;  %v1461_v55 = vpop.eup %1460  ;;  %1225 = vst [vmem:[#allocation2 + $0x130] sm:$0xff] %v1161_v43  ;;  %1486 = vpow2.f32 %v831_v39  ;;  %v625_v10 = vadd.f32 %v1948_v36, %v1918_v42  ;;  %v503_v11 = vadd.f32 %v502_v29, %v1874_v45  ;;  %v1068_v63 = vmax.f32 %v465_v56, 0.0 }
 0x116   :  { %v1463_v58 = vpop.eup %1462  ;;  %v1130_v48 = vmul.f32 %v1461_v55, %v1066_v20  ;;  %1488 = vrcp.f32 %v973_v41  ;;  %v506_v60 = vpop.f32.mrf.mxu0  ;;  %v471_v8 = vadd.f32 %v1955_v44, %v1918_v42  ;;  %v833_v20 = vmul.f32 1.442695, %v754_v19 }
 0x117   :  { %v666_v4 = vpop.f32.mrf.mxu1  ;;  %v1465_v62 = vpop.eup %1464  ;;  %v1162_v5 = vmul.f32 %v1463_v58, %v1098_v40  ;;  %1490 = vpow2.f32 %v895_v18  ;;  %v897_v25 = vmul.f32 1.442695, %v786_v6  ;;  %v755_v36 = vsub.f32 0.0, %v503_v11 }
 0x118   :  { %v1467_v7 = vpop.eup %1466  ;;  %1194 = vst [vmem:[#allocation2 + $0x38] sm:$0xff] %v1130_v48  ;;  %v1131_v35 = vmul.f32 %v1465_v62, %v1067_v59  ;;  %v2052_v13 = vpop.f32.mrf.mxu0  ;;  %v663_v9 = vadd.f32 %v662_v53, %v1874_v45  ;;  %v631_v31 = vadd.f32 %v1957_v2, %v1918_v42  ;;  %v507_v32 = vadd.f32 %v506_v60, %v1874_v45 }
 0x119   :  { %v2054_v14 = vpop.f32.mrf.mxu1  ;;  %v1469_v15 = vpop.eup %1468  ;;  %1226 = vst [vmem:[#allocation2 + $0x138] sm:$0xff] %v1162_v5  ;;  %v942_v47 = vadd.f32 1.0, %v1467_v7  ;;  %v1100_v29 = vmax.f32 %v625_v10, 0.0  ;;  %v1069_v40 = vmax.f32 %v471_v8, 0.0  ;;  %v835_v49 = vmul.f32 1.442695, %v755_v36 }
 0x11a   :  { %v1471_v23 = vpop.eup %1470  ;;  %1195 = vst [vmem:[#allocation2 + $0x40] sm:$0xff] %v1131_v35  ;;  %v974_v16 = vadd.f32 1.0, %v1469_v15  ;;  %v512_v26 = vpop.f32.mrf.mxu0  ;;  %v787_v43 = vsub.f32 0.0, %v663_v9  ;;  %v756_v57 = vsub.f32 0.0, %v507_v32  ;;  %v1101_v18 = vmax.f32 %v631_v31, 0.0 }
 0x11b   :  { %v672_v27 = vpop.f32.mrf.mxu1  ;;  %v1473_v0 = vpop.eup %1472  ;;  %v1163_v30 = vmul.f32 %v1471_v23, %v1099_v61  ;;  %1492 = vrcp.f32 %v942_v47  ;;  %v667_v60 = vadd.f32 %v666_v4, %v1874_v45  ;;  %v475_v61 = vadd.f32 %v1971_v21, %v1918_v42 }
 0x11c   :  { %v1475_v44 = vpop.eup %1474  ;;  %v1132_v37 = vmul.f32 %v1473_v0, %v1068_v63  ;;  %1494 = vrcp.f32 %v974_v16  ;;  %v2062_v38 = vpop.f32.mrf.mxu0  ;;  %v899_v56 = vmul.f32 1.442695, %v787_v43  ;;  %v635_v19 = vadd.f32 %v1973_v22, %v1918_v42 }
 0x11d   :  { %v2064_v39 = vpop.f32.mrf.mxu1  ;;  %v1477_v53 = vpop.eup %1476  ;;  %1227 = vst [vmem:[#allocation2 + $0x140] sm:$0xff] %v1163_v30  ;;  %v943_v41 = vadd.f32 1.0, %v1475_v44  ;;  %1496 = vpow2.f32 %v833_v20  ;;  %v2077_v10 = vadd.f32 %v1980_v50, %v1918_v42  ;;  %v788_v11 = vsub.f32 0.0, %v667_v60 }
 0x11e   :  { %v1479_v55 = vpop.eup %1478  ;;  %1196 = vst [vmem:[#allocation2 + $0x48] sm:$0xff] %v1132_v37  ;;  %v975_v2 = vadd.f32 1.0, %v1477_v53  ;;  %1498 = vpow2.f32 %v897_v25  ;;  %v516_v17 = vpop.f32.mrf.mxu0  ;;  %v837_v63 = vmul.f32 1.442695, %v756_v57  ;;  %v513_v22 = vadd.f32 %v512_v26, %v1874_v45 }
 0x11f   :  { %v676_v58 = vpop.f32.mrf.mxu1  ;;  %v1481_v48 = vpop.eup %1480  ;;  %v1164_v59 = vmul.f32 %v1479_v55, %v1100_v29  ;;  %1500 = vrcp.f32 %v943_v41  ;;  %v901_v16 = vmul.f32 1.442695, %v788_v11  ;;  %v673_v25 = vadd.f32 %v672_v27, %v1874_v45 }
 0x120   :  { %v1483_v62 = vpop.eup %1482  ;;  %v1133_v5 = vmul.f32 %v1481_v48, %v1069_v40  ;;  %1502 = vrcp.f32 %v975_v2  ;;  %v2071_v6 = vpop.f32.mrf.mxu0  ;;  %v1070_v36 = vmax.f32 %v475_v61, 0.0  ;;  %v757_v9 = vsub.f32 0.0, %v513_v22 }
 0x121   :  { %v2073_v7 = vpop.f32.mrf.mxu1  ;;  %v1485_v35 = vpop.eup %1484  ;;  %1228 = vst [vmem:[#allocation2 + $0x148] sm:$0xff] %v1164_v59  ;;  %v944_v4 = vadd.f32 1.0, %v1483_v62  ;;  %1504 = vpow2.f32 %v835_v49  ;;  %v1102_v32 = vmax.f32 %v635_v19, 0.0  ;;  %v789_v26 = vsub.f32 0.0, %v673_v25 }
 0x122   :  { %v1487_v15 = vpop.eup %1486  ;;  %1197 = vst [vmem:[#allocation2 + $0x50] sm:$0xff] %v1133_v5  ;;  %v976_v21 = vadd.f32 1.0, %v1485_v35  ;;  %1506 = vpow2.f32 %v899_v56  ;;  %v522_v8 = vpop.f32.mrf.mxu0  ;;  %v517_v44 = vadd.f32 %v516_v17, %v1874_v45  ;;  %v641_v29 = vadd.f32 %v1982_v51, %v1918_v42 }
 0x123   :  { %v682_v47 = vpop.f32.mrf.mxu1  ;;  %v1489_v20 = vpop.eup %1488  ;;  %1508 = vrcp.f32 %v944_v4  ;;  %v945_v23 = vadd.f32 1.0, %v1487_v15  ;;  %v839_v27 = vmul.f32 1.442695, %v757_v9  ;;  %v1071_v40 = vmax.f32 %v2077_v10, 0.0 }
 0x124   :  { %v1165_v50 = vmul.f32 %v1489_v20, %v1101_v18  ;;  %1510 = vrcp.f32 %v976_v21  ;;  %v2081_v0 = vpop.f32.mrf.mxu0  ;;  %v1491_v31 = vpop.eup %1490  ;;  %v903_v41 = vmul.f32 1.442695, %v789_v26  ;;  %v758_v49 = vsub.f32 0.0, %v517_v44 }
 0x125   :  { %v2083_v30 = vpop.f32.mrf.mxu1  ;;  %1512 = vrcp.f32 %v945_v23  ;;  %v977_v37 = vadd.f32 1.0, %v1491_v31  ;;  %v485_v2 = vadd.f32 %v1992_v12, %v1918_v42  ;;  %v2093_v56 = vadd.f32 %v1994_v28, %v1918_v42 }
 0x126   :  { %1229 = vst [vmem:[#allocation2 + $0x150] sm:$0xff] %v1165_v50  ;;  %1514 = vpow2.f32 %v837_v63  ;;  %v526_v43 = vpop.f32.mrf.mxu0  ;;  %v677_v51 = vadd.f32 %v676_v58, %v1874_v45  ;;  %v841_v18 = vmul.f32 1.442695, %v758_v49  ;;  %v523_v60 = vadd.f32 %v522_v8, %v1874_v45 }
 0x127   :  { %v686_v53 = vpop.f32.mrf.mxu1  ;;  %1516 = vpow2.f32 %v901_v16  ;;  %v1103_v12 = vmax.f32 %v641_v29, 0.0  ;;  %v491_v35 = vadd.f32 %v2007_v33, %v1918_v42  ;;  %v1072_v15 = vmax.f32 %v485_v2, 0.0 }
 0x128   :  { %v1493_v55 = vpop.eup %1492  ;;  %1518 = vrcp.f32 %v977_v37  ;;  %v2096_v57 = vpop.f32.mrf.mxu0  ;;  %v790_v61 = vsub.f32 0.0, %v677_v51  ;;  %v759_v4 = vsub.f32 0.0, %v523_v60  ;;  %v683_v22 = vadd.f32 %v682_v47, %v1874_v45 }
 0x129   :  { %v2098_v17 = vpop.f32.mrf.mxu1  ;;  %v1495_v48 = vpop.eup %1494  ;;  %v1134_v59 = vmul.f32 %v1493_v55, %v1070_v36  ;;  %1520 = vpow2.f32 %v839_v27  ;;  %v1104_v25 = vmax.f32 %v2093_v56, 0.0  ;;  %v651_v9 = vadd.f32 %v2009_v34, %v1918_v42 }
 0x12a   :  { %v1497_v62 = vpop.eup %1496  ;;  %v1166_v5 = vmul.f32 %v1495_v48, %v1102_v32  ;;  %1522 = vpow2.f32 %v903_v41  ;;  %v2101_v28 = vpop.f32.mrf.mxu0  ;;  %v905_v63 = vmul.f32 1.442695, %v790_v61  ;;  %v843_v33 = vmul.f32 1.442695, %v759_v4 }
 0x12b   :  { %v2103_v19 = vpop.f32.mrf.mxu1  ;;  %v1499_v58 = vpop.eup %1498  ;;  %1198 = vst [vmem:[#allocation2 + $0x58] sm:$0xff] %v1134_v59  ;;  %v946_v10 = vadd.f32 1.0, %v1497_v62  ;;  %1524 = vpow2.f32 %v841_v18  ;;  %v791_v31 = vsub.f32 0.0, %v683_v22  ;;  %v1073_v44 = vmax.f32 %v491_v35, 0.0 }
 0x12c   :  { %v1501_v11 = vpop.eup %1500  ;;  %1230 = vst [vmem:[#allocation2 + $0x158] sm:$0xff] %v1166_v5  ;;  %v978_v21 = vadd.f32 1.0, %v1499_v58  ;;  %v2108_v8 = vpop.f32.mrf.mxu0  ;;  %v527_v37 = vadd.f32 %v526_v43, %v1874_v45  ;;  %v687_v34 = vadd.f32 %v686_v53, %v1874_v45  ;;  %v495_v51 = vadd.f32 %v2021_v1, %v1918_v42 }
 0x12d   :  { %v2110_v20 = vpop.f32.mrf.mxu1  ;;  %v1503_v23 = vpop.eup %1502  ;;  %v1135_v16 = vmul.f32 %v1501_v11, %v1071_v40  ;;  %1526 = vrcp.f32 %v946_v10  ;;  %v907_v41 = vmul.f32 1.442695, %v791_v31  ;;  %v1105_v1 = vmax.f32 %v651_v9, 0.0 }
 0x12e   :  { %v1505_v50 = vpop.eup %1504  ;;  %v1167_v36 = vmul.f32 %v1503_v23, %v1103_v12  ;;  %1528 = vrcp.f32 %v978_v21  ;;  %v2115_v32 = vpop.f32.mrf.mxu0  ;;  %v760_v48 = vsub.f32 0.0, %v527_v37  ;;  %v792_v18 = vsub.f32 0.0, %v687_v34 }
 0x12f   :  { %v2117_v47 = vpop.f32.mrf.mxu1  ;;  %v1507_v26 = vpop.eup %1506  ;;  %1199 = vst [vmem:[#allocation2 + $0x60] sm:$0xff] %v1135_v16  ;;  %v947_v29 = vadd.f32 1.0, %v1505_v50  ;;  %1530 = vpow2.f32 %v905_v63  ;;  %v655_v12 = vadd.f32 %v2023_v3, %v1918_v42  ;;  %v533_v4 = vadd.f32 %v2101_v28, %v1874_v45 }
 0x130   :  { %v1509_v27 = vpop.eup %1508  ;;  %1231 = vst [vmem:[#allocation2 + $0x160] sm:$0xff] %v1167_v36  ;;  %v979_v40 = vadd.f32 1.0, %v1507_v26  ;;  %1532 = vpow2.f32 %v843_v33  ;;  %v2121_v49 = vpop.f32.mrf.mxu0  ;;  %v845_v61 = vmul.f32 1.442695, %v760_v48  ;;  %v909_v10 = vmul.f32 1.442695, %v792_v18 }
 0x131   :  { %v2123_v55 = vpop.f32.mrf.mxu1  ;;  %v1511_v2 = vpop.eup %1510  ;;  %v1136_v56 = vmul.f32 %v1509_v27, %v1072_v15  ;;  %1534 = vrcp.f32 %v947_v29  ;;  %v1074_v63 = vmax.f32 %v495_v51, 0.0  ;;  %v693_v3 = vadd.f32 %v2103_v19, %v1874_v45 }
 0x132   :  { %v1513_v59 = vpop.eup %1512  ;;  %v1168_v43 = vmul.f32 %v1511_v2, %v1104_v25  ;;  %1536 = vrcp.f32 %v979_v40  ;;  %v542_v60 = vpop.f32.mrf.mxu0  ;;  %v501_v25 = vadd.f32 %v2032_v52, %v1918_v42  ;;  %v761_v33 = vsub.f32 0.0, %v533_v4 }
 0x133   :  { %v2127_v62 = vpop.f32.mrf.mxu1  ;;  %v1515_v5 = vpop.eup %1514  ;;  %1200 = vst [vmem:[#allocation2 + $0x68] sm:$0xff] %v1136_v56  ;;  %v1137_v53 = vmul.f32 %v1513_v59, %v1073_v44  ;;  %1538 = vpow2.f32 %v907_v41  ;;  %v1106_v9 = vmax.f32 %v655_v12, 0.0  ;;  %v793_v26 = vsub.f32 0.0, %v693_v3 }
 0x134   :  { %v1517_v58 = vpop.eup %1516  ;;  %1232 = vst [vmem:[#allocation2 + $0x168] sm:$0xff] %v1168_v43  ;;  %v948_v35 = vadd.f32 1.0, %v1515_v5  ;;  %v2133_v11 = vpop.f32.mrf.mxu0  ;;  %1540 = vpow2.f32 %v845_v61  ;;  %v661_v19 = vadd.f32 %v2034_v24, %v1918_v42  ;;  %v847_v37 = vmul.f32 1.442695, %v761_v33 }
 0x135   :  { %v2135_v15 = vpop.f32.mrf.mxu1  ;;  %v1519_v21 = vpop.eup %1518  ;;  %1201 = vst [vmem:[#allocation2 + $0x70] sm:$0xff] %v1137_v53  ;;  %v980_v22 = vadd.f32 1.0, %v1517_v58  ;;  %v911_v41 = vmul.f32 1.442695, %v793_v26  ;;  %v537_v34 = vadd.f32 %v2115_v32, %v1874_v45  ;;  %v1075_v56 = vmax.f32 %v501_v25, 0.0 }
 0x136   :  { %v1521_v23 = vpop.eup %1520  ;;  %v1169_v16 = vmul.f32 %v1519_v21, %v1105_v1  ;;  %1542 = vrcp.f32 %v948_v35  ;;  %v2141_v28 = vpop.f32.mrf.mxu0  ;;  %v2155_v51 = vadd.f32 %v2041_v54, %v1918_v42  ;;  %v697_v24 = vadd.f32 %v2117_v47, %v1874_v45 }
 0x137   :  { %v2143_v50 = vpop.f32.mrf.mxu1  ;;  %v1523_v36 = vpop.eup %1522  ;;  %1544 = vrcp.f32 %v980_v22  ;;  %v949_v31 = vadd.f32 1.0, %v1521_v23  ;;  %v762_v5 = vsub.f32 0.0, %v537_v34  ;;  %v543_v32 = vadd.f32 %v542_v60, %v1874_v45 }
 0x138   :  { %v1525_v44 = vpop.eup %1524  ;;  %1233 = vst [vmem:[#allocation2 + $0x170] sm:$0xff] %v1169_v16  ;;  %v981_v29 = vadd.f32 1.0, %v1523_v36  ;;  %1546 = vpow2.f32 %v909_v10  ;;  %v2147_v52 = vpop.f32.mrf.mxu0  ;;  %v1107_v61 = vmax.f32 %v661_v19, 0.0  ;;  %v794_v54 = vsub.f32 0.0, %v697_v24 }
 0x139   :  { %v2149_v27 = vpop.f32.mrf.mxu1  ;;  %1548 = vrcp.f32 %v949_v31  ;;  %v950_v40 = vadd.f32 1.0, %v1525_v44  ;;  %v665_v35 = vadd.f32 %v2043_v46, %v1918_v42  ;;  %v849_v4 = vmul.f32 1.442695, %v762_v5 }
 0x13a   :  { %v1527_v2 = vpop.eup %1526  ;;  %1550 = vrcp.f32 %v981_v29  ;;  %v2159_v48 = vpop.f32.mrf.mxu0  ;;  %v763_v22 = vsub.f32 0.0, %v543_v32  ;;  %v703_v3 = vadd.f32 %v2127_v62, %v1874_v45  ;;  %v1076_v36 = vmax.f32 %v2155_v51, 0.0 }
 0x13b   :  { %v2161_v59 = vpop.f32.mrf.mxu1  ;;  %v1529_v43 = vpop.eup %1528  ;;  %v1138_v18 = vmul.f32 %v1527_v2, %v1074_v63  ;;  %1552 = vrcp.f32 %v950_v40  ;;  %v913_v63 = vmul.f32 1.442695, %v794_v54  ;;  %v511_v46 = vadd.f32 %v2052_v13, %v1918_v42 }
 0x13c   :  { %v1531_v53 = vpop.eup %1530  ;;  %v1170_v12 = vmul.f32 %v1529_v43, %v1106_v9  ;;  %1554 = vpow2.f32 %v847_v37  ;;  %v2164_v58 = vpop.f32.mrf.mxu0  ;;  %v851_v26 = vmul.f32 1.442695, %v763_v22  ;;  %v795_v44 = vsub.f32 0.0, %v703_v3 }
 0x13d   :  { %v2166_v1 = vpop.f32.mrf.mxu1  ;;  %v1533_v47 = vpop.eup %1532  ;;  %1202 = vst [vmem:[#allocation2 + $0x78] sm:$0xff] %v1138_v18  ;;  %v982_v10 = vadd.f32 1.0, %v1531_v53  ;;  %1556 = vpow2.f32 %v911_v41  ;;  %v1108_v62 = vmax.f32 %v665_v35, 0.0  ;;  %v671_v37 = vadd.f32 %v2054_v14, %v1918_v42 }
 0x13e   :  { %v1535_v21 = vpop.eup %1534  ;;  %1234 = vst [vmem:[#allocation2 + $0x178] sm:$0xff] %v1170_v12  ;;  %v951_v60 = vadd.f32 1.0, %v1533_v47  ;;  %v556_v23 = vpop.f32.mrf.mxu0  ;;  %v915_v13 = vmul.f32 1.442695, %v795_v44  ;;  %v547_v34 = vadd.f32 %v2141_v28, %v1874_v45  ;;  %v707_v2 = vadd.f32 %v2143_v50, %v1874_v45 }
 0x13f   :  { %v2172_v16 = vpop.f32.mrf.mxu1  ;;  %v1537_v25 = vpop.eup %1536  ;;  %v1139_v33 = vmul.f32 %v1535_v21, %v1075_v56  ;;  %1558 = vrcp.f32 %v982_v10  ;;  %v1077_v43 = vmax.f32 %v511_v46, 0.0  ;;  %v515_v14 = vadd.f32 %v2062_v38, %v1918_v42 }
 0x140   :  { %v1539_v9 = vpop.eup %1538  ;;  %v1171_v31 = vmul.f32 %v1537_v25, %v1107_v61  ;;  %1560 = vrcp.f32 %v951_v60  ;;  %v2177_v19 = vpop.f32.mrf.mxu0  ;;  %v764_v53 = vsub.f32 0.0, %v547_v34  ;;  %v796_v12 = vsub.f32 0.0, %v707_v2 }
 0x141   :  { %v2179_v29 = vpop.f32.mrf.mxu1  ;;  %1203 = vst [vmem:[#allocation2 + $0x80] sm:$0xff] %v1139_v33  ;;  %v983_v40 = vadd.f32 1.0, %v1539_v9  ;;  %1562 = vpow2.f32 %v849_v4  ;;  %v1541_v41 = vpop.eup %1540  ;;  %v1109_v54 = vmax.f32 %v671_v37, 0.0  ;;  %v675_v50 = vadd.f32 %v2064_v39, %v1918_v42 }
 0x142   :  { %1235 = vst [vmem:[#allocation2 + $0x180] sm:$0xff] %v1171_v31  ;;  %1564 = vpow2.f32 %v913_v63  ;;  %v2187_v56 = vpop.f32.mrf.mxu0  ;;  %v952_v18 = vadd.f32 1.0, %v1541_v41  ;;  %v853_v38 = vmul.f32 1.442695, %v764_v53  ;;  %v917_v4 = vmul.f32 1.442695, %v796_v12 }
 0x143   :  { %v2189_v51 = vpop.f32.mrf.mxu1  ;;  %v1543_v24 = vpop.eup %1542  ;;  %1566 = vrcp.f32 %v983_v40  ;;  %v1078_v22 = vmax.f32 %v515_v14, 0.0  ;;  %v553_v3 = vadd.f32 %v2159_v48, %v1874_v45  ;;  %v713_v39 = vadd.f32 %v2161_v59, %v1874_v45 }
 0x144   :  { %v1545_v5 = vpop.eup %1544  ;;  %v1140_v32 = vmul.f32 %v1543_v24, %v1076_v36  ;;  %1568 = vpow2.f32 %v851_v26  ;;  %v2195_v47 = vpop.f32.mrf.mxu0  ;;  %v521_v36 = vadd.f32 %v2071_v6, %v1918_v42  ;;  %v557_v46 = vadd.f32 %v556_v23, %v1874_v45 }
 0x145   :  { %v1547_v28 = vpop.eup %1546  ;;  %v1172_v61 = vmul.f32 %v1545_v5, %v1108_v62  ;;  %1570 = vrcp.f32 %v952_v18  ;;  %v2197_v21 = vpop.f32.mrf.mxu1  ;;  %v765_v26 = vsub.f32 0.0, %v553_v3  ;;  %v797_v44 = vsub.f32 0.0, %v713_v39 }
 0x146   :  { %v1549_v35 = vpop.eup %1548  ;;  %1204 = vst [vmem:[#allocation2 + $0x88] sm:$0xff] %v1140_v32  ;;  %v984_v10 = vadd.f32 1.0, %v1547_v28  ;;  %1572 = vpow2.f32 %v915_v13  ;;  %v566_v62 = vpop.f32.mrf.mxu0  ;;  %v1110_v48 = vmax.f32 %v675_v50, 0.0  ;;  %v681_v59 = vadd.f32 %v2073_v7, %v1918_v42 }
 0x147   :  { %v1551_v60 = vpop.eup %1550  ;;  %1236 = vst [vmem:[#allocation2 + $0x188] sm:$0xff] %v1172_v61  ;;  %v1141_v63 = vmul.f32 %v1549_v35, %v1077_v43  ;;  %v726_v41 = vpop.f32.mrf.mxu1  ;;  %v855_v13 = vmul.f32 1.442695, %v765_v26  ;;  %v919_v23 = vmul.f32 1.442695, %v797_v44  ;;  %v766_v34 = vsub.f32 0.0, %v557_v46 }
 0x148   :  { %v1553_v25 = vpop.eup %1552  ;;  %v1173_v33 = vmul.f32 %v1551_v60, %v1109_v54  ;;  %1574 = vrcp.f32 %v984_v10  ;;  %v1079_v24 = vmax.f32 %v521_v36, 0.0  ;;  %v525_v43 = vadd.f32 %v2081_v0, %v1918_v42  ;;  %v2214_v53 = vpop.f32.mrf.mxu0 }
 0x149   :  { %v1555_v9 = vpop.eup %1554  ;;  %1205 = vst [vmem:[#allocation2 + $0x90] sm:$0xff] %v1141_v63  ;;  %v1142_v31 = vmul.f32 %v1553_v25, %v1078_v22  ;;  %1576 = vpow2.f32 %v853_v38  ;;  %v717_v14 = vadd.f32 %v2172_v16, %v1874_v45  ;;  %v857_v7 = vmul.f32 1.442695, %v766_v34  ;;  %v2218_v54 = vpop.f32.mrf.mxu1 }
 0x14a   :  { %v1557_v37 = vpop.eup %1556  ;;  %1237 = vst [vmem:[#allocation2 + $0x190] sm:$0xff] %v1173_v33  ;;  %v953_v40 = vadd.f32 1.0, %v1555_v9  ;;  %1578 = vpow2.f32 %v917_v4  ;;  %v563_v32 = vadd.f32 %v2187_v56, %v1874_v45  ;;  %v685_v61 = vadd.f32 %v2083_v30, %v1918_v42  ;;  %v572_v39 = vpop.f32.mrf.mxu0 }
 0x14b   :  { %1206 = vst [vmem:[#allocation2 + $0x98] sm:$0xff] %v1142_v31  ;;  %v985_v6 = vadd.f32 1.0, %v1557_v37  ;;  %v798_v0 = vsub.f32 0.0, %v717_v14  ;;  %v1111_v16 = vmax.f32 %v681_v59, 0.0  ;;  %v723_v60 = vadd.f32 %v2189_v51, %v1874_v45  ;;  %v732_v9 = vpop.f32.mrf.mxu1 }
 0x14c   :  { %v1559_v2 = vpop.eup %1558  ;;  %1580 = vrcp.f32 %v953_v40  ;;  %v767_v10 = vsub.f32 0.0, %v563_v32  ;;  %v1080_v22 = vmax.f32 %v525_v43, 0.0  ;;  %v1112_v33 = vmax.f32 %v685_v61, 0.0  ;;  %v2230_v34 = vpop.f32.mrf.mxu0 }
 0x14d   :  { %v1561_v18 = vpop.eup %1560  ;;  %v1174_v5 = vmul.f32 %v1559_v2, %v1110_v48  ;;  %1582 = vrcp.f32 %v985_v6  ;;  %v921_v4 = vmul.f32 1.442695, %v798_v0  ;;  %v799_v46 = vsub.f32 0.0, %v723_v60 }
 0x14e   :  { %v1563_v12 = vpop.eup %1562  ;;  %v1143_v28 = vmul.f32 %v1561_v18, %v1079_v24  ;;  %1584 = vpow2.f32 %v855_v13  ;;  %v859_v3 = vmul.f32 1.442695, %v767_v10  ;;  %v531_v44 = vadd.f32 %v2096_v57, %v1918_v42  ;;  %v2235_v24 = vpop.f32.mrf.mxu1 }
 0x14f   :  { %v1565_v50 = vpop.eup %1564  ;;  %1238 = vst [vmem:[#allocation2 + $0x198] sm:$0xff] %v1174_v5  ;;  %v954_v35 = vadd.f32 1.0, %v1563_v12  ;;  %1586 = vpow2.f32 %v919_v23  ;;  %v567_v51 = vadd.f32 %v566_v62, %v1874_v45  ;;  %v691_v37 = vadd.f32 %v2098_v17, %v1918_v42  ;;  %v576_v61 = vpop.f32.mrf.mxu0 }
 0x150   :  { %v1567_v38 = vpop.eup %1566  ;;  %1207 = vst [vmem:[#allocation2 + $0xa0] sm:$0xff] %v1143_v28  ;;  %v986_v56 = vadd.f32 1.0, %v1565_v50  ;;  %1588 = vpow2.f32 %v857_v7  ;;  %v923_v59 = vmul.f32 1.442695, %v799_v46  ;;  %v535_v6 = vadd.f32 %v2108_v8, %v1918_v42  ;;  %v736_v10 = vpop.f32.mrf.mxu1 }
 0x151   :  { %v1569_v63 = vpop.eup %1568  ;;  %v1175_v30 = vmul.f32 %v1567_v38, %v1111_v16  ;;  %1590 = vrcp.f32 %v954_v35  ;;  %v768_v13 = vsub.f32 0.0, %v567_v51  ;;  %v727_v23 = vadd.f32 %v726_v41, %v1874_v45 }
 0x152   :  { %v1571_v25 = vpop.eup %1570  ;;  %1592 = vrcp.f32 %v986_v56  ;;  %v955_v36 = vadd.f32 1.0, %v1569_v63  ;;  %v695_v62 = vadd.f32 %v2110_v20, %v1918_v42  ;;  %v573_v17 = vadd.f32 %v572_v39, %v1874_v45 }
 0x153   :  { %v1573_v31 = vpop.eup %1572  ;;  %1239 = vst [vmem:[#allocation2 + $0x1a0] sm:$0xff] %v1175_v30  ;;  %v1144_v26 = vmul.f32 %v1571_v25, %v1080_v22  ;;  %1594 = vpow2.f32 %v921_v4  ;;  %v861_v8 = vmul.f32 1.442695, %v768_v13  ;;  %v800_v18 = vsub.f32 0.0, %v727_v23 }
 0x154   :  { %1596 = vrcp.f32 %v955_v36  ;;  %v987_v48 = vadd.f32 1.0, %v1573_v31  ;;  %v1081_v5 = vmax.f32 %v531_v44, 0.0  ;;  %v769_v7 = vsub.f32 0.0, %v573_v17 }
 0x155   :  { %v1575_v40 = vpop.eup %1574  ;;  %1208 = vst [vmem:[#allocation2 + $0xa8] sm:$0xff] %v1144_v26  ;;  %1598 = vpow2.f32 %v859_v3  ;;  %v1113_v12 = vmax.f32 %v691_v37, 0.0  ;;  %v925_v28 = vmul.f32 1.442695, %v800_v18  ;;  %v733_v20 = vadd.f32 %v732_v9, %v1874_v45 }
 0x156   :  { %v1577_v57 = vpop.eup %1576  ;;  %v1176_v2 = vmul.f32 %v1575_v40, %v1112_v33  ;;  %1600 = vrcp.f32 %v987_v48  ;;  %v1082_v16 = vmax.f32 %v535_v6, 0.0  ;;  %v863_v35 = vmul.f32 1.442695, %v769_v7 }
 0x157   :  { %v1579_v43 = vpop.eup %1578  ;;  %v956_v14 = vadd.f32 1.0, %v1577_v57  ;;  %1602 = vpow2.f32 %v923_v59  ;;  %v1114_v4 = vmax.f32 %v695_v62, 0.0  ;;  %v801_v60 = vsub.f32 0.0, %v733_v20 }
 0x158   :  { %1240 = vst [vmem:[#allocation2 + $0x1a8] sm:$0xff] %v1176_v2  ;;  %v988_v41 = vadd.f32 1.0, %v1579_v43  ;;  %v541_v30 = vadd.f32 %v2121_v49, %v1918_v42  ;;  %v577_v3 = vadd.f32 %v576_v61, %v1874_v45  ;;  %v737_v36 = vadd.f32 %v736_v10, %v1874_v45 }
 0x159   :  { %v1581_v32 = vpop.eup %1580  ;;  %1604 = vrcp.f32 %v956_v14  ;;  %v927_v33 = vmul.f32 1.442695, %v801_v60  ;;  %v701_v9 = vadd.f32 %v2123_v55, %v1918_v42  ;;  %v545_v45 = vadd.f32 %v2133_v11, %v1918_v42 }
 0x15a   :  { %v1583_v0 = vpop.eup %1582  ;;  %v1145_v50 = vmul.f32 %v1581_v32, %v1081_v5  ;;  %1606 = vrcp.f32 %v988_v41  ;;  %v770_v26 = vsub.f32 0.0, %v577_v3  ;;  %v802_v51 = vsub.f32 0.0, %v737_v36 }
 0x15b   :  { %v1585_v38 = vpop.eup %1584  ;;  %v1177_v56 = vmul.f32 %v1583_v0, %v1113_v12  ;;  %1608 = vpow2.f32 %v861_v8  ;;  %v1083_v59 = vmax.f32 %v541_v30, 0.0  ;;  %v1115_v57 = vmax.f32 %v701_v9, 0.0 }
 0x15c   :  { %v1587_v63 = vpop.eup %1586  ;;  %1209 = vst [vmem:[#allocation2 + $0xb0] sm:$0xff] %v1145_v50  ;;  %v957_v22 = vadd.f32 1.0, %v1585_v38  ;;  %1610 = vpow2.f32 %v925_v28  ;;  %v865_v40 = vmul.f32 1.442695, %v770_v26  ;;  %v929_v55 = vmul.f32 1.442695, %v802_v51 }
 0x15d   :  { %v1589_v39 = vpop.eup %1588  ;;  %1241 = vst [vmem:[#allocation2 + $0x1b0] sm:$0xff] %v1177_v56  ;;  %v989_v25 = vadd.f32 1.0, %v1587_v63  ;;  %1612 = vpow2.f32 %v863_v35  ;;  %v705_v62 = vadd.f32 %v2135_v15, %v1918_v42  ;;  %v1084_v18 = vmax.f32 %v545_v45, 0.0 }
 0x15e   :  { %v1591_v46 = vpop.eup %1590  ;;  %1614 = vrcp.f32 %v957_v22  ;;  %v958_v31 = vadd.f32 1.0, %v1589_v39  ;;  %v551_v7 = vadd.f32 %v2147_v52, %v1918_v42  ;;  %v711_v15 = vadd.f32 %v2149_v27, %v1918_v42 }
 0x15f   :  { %v1593_v44 = vpop.eup %1592  ;;  %v1146_v49 = vmul.f32 %v1591_v46, %v1082_v16  ;;  %1616 = vrcp.f32 %v989_v25  ;;  %v1116_v41 = vmax.f32 %v705_v62, 0.0  ;;  %v555_v61 = vadd.f32 %v2164_v58, %v1918_v42 }
 0x160   :  { %v1595_v37 = vpop.eup %1594  ;;  %v1178_v48 = vmul.f32 %v1593_v44, %v1114_v4  ;;  %1618 = vrcp.f32 %v958_v31  ;;  %v1085_v35 = vmax.f32 %v551_v7, 0.0  ;;  %v1117_v52 = vmax.f32 %v711_v15, 0.0 }
 0x161   :  { %v1597_v6 = vpop.eup %1596  ;;  %1210 = vst [vmem:[#allocation2 + $0xb8] sm:$0xff] %v1146_v49  ;;  %v990_v13 = vadd.f32 1.0, %v1595_v37  ;;  %1620 = vpow2.f32 %v927_v33  ;;  %v715_v56 = vadd.f32 %v2166_v1, %v1918_v42  ;;  %v1086_v63 = vmax.f32 %v555_v61, 0.0 }
 0x162   :  { %v1599_v23 = vpop.eup %1598  ;;  %1242 = vst [vmem:[#allocation2 + $0x1b8] sm:$0xff] %v1178_v48  ;;  %v1147_v2 = vmul.f32 %v1597_v6, %v1083_v59  ;;  %1622 = vpow2.f32 %v865_v40  ;;  %v561_v22 = vadd.f32 %v2177_v19, %v1918_v42  ;;  %v721_v1 = vadd.f32 %v2179_v29, %v1918_v42 }
 0x163   :  { %v1601_v17 = vpop.eup %1600  ;;  %1624 = vrcp.f32 %v990_v13  ;;  %v959_v43 = vadd.f32 1.0, %v1599_v23  ;;  %v1118_v33 = vmax.f32 %v715_v56, 0.0  ;;  %v565_v48 = vadd.f32 %v2195_v47, %v1918_v42 }
 0x164   :  { %v1603_v14 = vpop.eup %1602  ;;  %1211 = vst [vmem:[#allocation2 + $0xc0] sm:$0xff] %v1147_v2  ;;  %v1179_v8 = vmul.f32 %v1601_v17, %v1115_v57  ;;  %1626 = vpow2.f32 %v929_v55  ;;  %v1087_v44 = vmax.f32 %v561_v22, 0.0  ;;  %v1119_v51 = vmax.f32 %v721_v1, 0.0 }
 0x165   :  { %1628 = vrcp.f32 %v959_v43  ;;  %v991_v11 = vadd.f32 1.0, %v1603_v14  ;;  %v725_v29 = vadd.f32 %v2197_v21, %v1918_v42  ;;  %v571_v6 = vadd.f32 %v2214_v53, %v1918_v42 }
 0x166   :  { %v1605_v5 = vpop.eup %1604  ;;  %1243 = vst [vmem:[#allocation2 + $0x1c0] sm:$0xff] %v1179_v8  ;;  %v1088_v45 = vmax.f32 %v565_v48, 0.0  ;;  %v731_v47 = vadd.f32 %v2218_v54, %v1918_v42  ;;  %v575_v21 = vadd.f32 %v2230_v34, %v1918_v42  ;;  %v735_v53 = vadd.f32 %v2235_v24, %v1918_v42 }
 0x167   :  { %v1607_v32 = vpop.eup %1606  ;;  %v1148_v12 = vmul.f32 %v1605_v5, %v1084_v18  ;;  %1630 = vrcp.f32 %v991_v11  ;;  %v1120_v55 = vmax.f32 %v725_v29, 0.0  ;;  %v1089_v2 = vmax.f32 %v571_v6, 0.0 }
 0x168   :  { %v1609_v28 = vpop.eup %1608  ;;  %v1180_v20 = vmul.f32 %v1607_v32, %v1116_v41  ;;  %v1121_v14 = vmax.f32 %v731_v47, 0.0  ;;  %v1090_v18 = vmax.f32 %v575_v21, 0.0  ;;  %v1122_v54 = vmax.f32 %v735_v53, 0.0 }
 0x169   :  { %v1611_v0 = vpop.eup %1610  ;;  %1212 = vst [vmem:[#allocation2 + $0xc8] sm:$0xff] %v1148_v12  ;;  %v960_v50 = vadd.f32 1.0, %v1609_v28 }
 0x16a   :  { %v1613_v16 = vpop.eup %1612  ;;  %1244 = vst [vmem:[#allocation2 + $0x1c8] sm:$0xff] %v1180_v20  ;;  %v992_v10 = vadd.f32 1.0, %v1611_v0 }
 0x16b   :  { %v1615_v38 = vpop.eup %1614  ;;  %1632 = vrcp.f32 %v960_v50  ;;  %v961_v27 = vadd.f32 1.0, %v1613_v16 }
 0x16c   :  { %v1617_v4 = vpop.eup %1616  ;;  %v1149_v60 = vmul.f32 %v1615_v38, %v1085_v35  ;;  %1634 = vrcp.f32 %v992_v10 }
 0x16d   :  { %v1619_v30 = vpop.eup %1618  ;;  %v1181_v58 = vmul.f32 %v1617_v4, %v1117_v52  ;;  %1636 = vrcp.f32 %v961_v27 }
 0x16e   :  { %v1621_v3 = vpop.eup %1620  ;;  %1213 = vst [vmem:[#allocation2 + $0xd0] sm:$0xff] %v1149_v60  ;;  %v1150_v39 = vmul.f32 %v1619_v30, %v1086_v63 }
 0x16f   :  { %v1623_v25 = vpop.eup %1622  ;;  %1245 = vst [vmem:[#allocation2 + $0x1d0] sm:$0xff] %v1181_v58  ;;  %v993_v36 = vadd.f32 1.0, %v1621_v3 }
 0x170   :  { %v1625_v46 = vpop.eup %1624  ;;  %1214 = vst [vmem:[#allocation2 + $0xd8] sm:$0xff] %v1150_v39  ;;  %v962_v9 = vadd.f32 1.0, %v1623_v25 }
 0x171   :  { %v1627_v31 = vpop.eup %1626  ;;  %v1182_v26 = vmul.f32 %v1625_v46, %v1118_v33  ;;  %1638 = vrcp.f32 %v993_v36 }
 0x172   :  { %v1629_v49 = vpop.eup %1628  ;;  %1640 = vrcp.f32 %v962_v9  ;;  %v994_v19 = vadd.f32 1.0, %v1627_v31 }
 0x173   :  { %1246 = vst [vmem:[#allocation2 + $0x1d8] sm:$0xff] %v1182_v26  ;;  %v1151_v37 = vmul.f32 %v1629_v49, %v1087_v44 }
 0x174   :  { %v1631_v59 = vpop.eup %1630  ;;  %1642 = vrcp.f32 %v994_v19 }
 0x175   :  { %1215 = vst [vmem:[#allocation2 + $0xe0] sm:$0xff] %v1151_v37  ;;  %v1183_v40 = vmul.f32 %v1631_v59, %v1119_v51 }
 0x177   :  { %1247 = vst [vmem:[#allocation2 + $0x1e0] sm:$0xff] %v1183_v40 }
 0x178   :  { %v1633_v13 = vpop.eup %1632 }
 0x179   :  { %v1635_v23 = vpop.eup %1634  ;;  %v1152_v57 = vmul.f32 %v1633_v13, %v1088_v45 }
 0x17a   :  { %v1637_v62 = vpop.eup %1636  ;;  %v1184_v17 = vmul.f32 %v1635_v23, %v1120_v55 }
 0x17b   :  { %1216 = vst [vmem:[#allocation2 + $0xe8] sm:$0xff] %v1152_v57  ;;  %v1153_v43 = vmul.f32 %v1637_v62, %v1089_v2 }
 0x17c   :  { %1248 = vst [vmem:[#allocation2 + $0x1e8] sm:$0xff] %v1184_v17 }
 0x17d   :  { %1217 = vst [vmem:[#allocation2 + $0xf0] sm:$0xff] %v1153_v43 }
 0x17e   :  { %v1639_v8 = vpop.eup %1638 }
 0x17f   :  { %v1641_v11 = vpop.eup %1640  ;;  %v1185_v5 = vmul.f32 %v1639_v8, %v1121_v14 }
 0x180   :  { %v1154_v41 = vmul.f32 %v1641_v11, %v1090_v18 }
 0x181   :  { %v1643_v7 = vpop.eup %1642  ;;  %1249 = vst [vmem:[#allocation2 + $0x1f0] sm:$0xff] %v1185_v5 }
 0x182   :  { %1218 = vst [vmem:[#allocation2 + $0xf8] sm:$0xff] %v1154_v41  ;;  %v1186_v34 = vmul.f32 %v1643_v7, %v1122_v54 }
 0x184   :  { %1250 = vst [vmem:[#allocation2 + $0x1f8] sm:$0xff] %v1186_v34 }
 0x185   :  { %1655 = shalt.err (!%p1652_p4)
}
 0x186   :  { %s1668_s5 = smov 128   ;;  %s1669_s6 = smov 8  }
 0x187   :  { %1262 = dma.vmem_to_hbm [thread:$0]  %s1257_s2, 8192, %s2278_s3, [#allocation3], %s1668_s5, %s1668_s5, %s1669_s6  }
 0x188   :  { %1664 = dma.done.wait [#allocation3], 8192  }
 0x189   :  { %1665 = vsyncadd [#allocation3], 4294959104 }
 0x18a   :  { %1266 = vsyncpa [#allocation3], 1 }

</bundles_post_ra>
